<compile_context>
chip_gen: v7x
topology: tpu7x:2x2x1
jax: 0.10.0
libtpu: 0.0.40
codegen_flags: <defaults>
</compile_context>

<pallas_src>
import functools

import jax
import jax.numpy as jnp
from jax.experimental import pallas as pl
from jax.experimental.pallas import tpu as pltpu


LANE = 128
SUBLANE = 8


def _round_up(x, m):
    return (x + m - 1) // m * m


# ---------------------------------------------------------------------------
# Kernels
# ---------------------------------------------------------------------------
def qa_heads_train_kernel(x_ref, bits1_ref, bits2_ref,
                          w1_ref, b1_ref, w2_ref, b2_ref,
                          o1_ref, o2_ref, *, keep_threshold, keep_scale):
    """One row tile: start = drop1(x) @ W1 + b1 ; end = drop2(x) @ W2 + b2."""
    x = x_ref[...]                                   # (TM, Hp) f32
    thr = jnp.uint32(keep_threshold)

    # dropout as a single integer-threshold compare; 1/(1-p) folded into the where
    x1 = jnp.where(bits1_ref[...] >= thr, x * keep_scale, 0.0)
    o1 = jnp.dot(x1, w1_ref[...], preferred_element_type=jnp.float32) + b1_ref[...]
    o1_ref[...] = o1.astype(o1_ref.dtype)

    x2 = jnp.where(bits2_ref[...] >= thr, x * keep_scale, 0.0)
    o2 = jnp.dot(x2, w2_ref[...], preferred_element_type=jnp.float32) + b2_ref[...]
    o2_ref[...] = o2.astype(o2_ref.dtype)


def qa_heads_eval_kernel(x_ref, w1_ref, b1_ref, w2_ref, b2_ref, o1_ref, o2_ref):
    """Inference path: dropout is identity."""
    x = x_ref[...]
    o1 = jnp.dot(x, w1_ref[...], preferred_element_type=jnp.float32) + b1_ref[...]
    o1_ref[...] = o1.astype(o1_ref.dtype)
    o2 = jnp.dot(x, w2_ref[...], preferred_element_type=jnp.float32) + b2_ref[...]
    o2_ref[...] = o2.astype(o2_ref.dtype)


# ---------------------------------------------------------------------------
# Host-side helpers / wrapper
# ---------------------------------------------------------------------------
def dropout_bits(key, shape):
    """Two independent uint32 bit tensors (one per dropout) — deterministic in key."""
    k1, k2 = jax.random.split(key)
    return (jax.random.bits(k1, shape, jnp.uint32),
            jax.random.bits(k2, shape, jnp.uint32))


def bertqa_heads_forward(hidden_states, w1, b1, w2, b2, *,
                         dropout_rate=0.1, training=True, dropout_key=None,
                         row_tile=256):
    """hidden_states: (B, S, H) f32; w1/w2: (H, num_labels); b1/b2: (num_labels,)."""
    B, S, H = hidden_states.shape
    num_labels = w1.shape[1]
    Btot = B * S
    x = hidden_states.reshape(Btot, H).astype(jnp.float32)

    # --- pad to lane/sublane friendly shapes -------------------------------
    Hp = _round_up(H, LANE)                      # K dim: multiple of 128
    Np = _round_up(max(num_labels, 1), LANE)     # logit dim: padded to 128 lanes
    TM = min(row_tile, _round_up(Btot, SUBLANE)) # row tile (multiple of 8)
    Mp = _round_up(Btot, TM)

    xp = jnp.zeros((Mp, Hp), jnp.float32).at[:Btot, :H].set(x)

    def pad_head(w, b):
        wp = jnp.zeros((Hp, Np), jnp.float32).at[:H, :num_labels].set(
            w.astype(jnp.float32))
        bp = jnp.zeros((1, Np), jnp.float32).at[0, :num_labels].set(
            b.astype(jnp.float32))
        return wp, bp

    w1p, b1p = pad_head(w1, b1)
    w2p, b2p = pad_head(w2, b2)

    grid = (Mp // TM,)
    x_spec = pl.BlockSpec((TM, Hp), lambda i: (i, 0))   # pipelined over row tiles
    w_spec = pl.BlockSpec((Hp, Np), lambda i: (0, 0))   # resident across the grid
    b_spec = pl.BlockSpec((1, Np), lambda i: (0, 0))
    o_spec = pl.BlockSpec((TM, Np), lambda i: (i, 0))   # lane-dense (128) stores
    out_shape = (jax.ShapeDtypeStruct((Mp, Np), jnp.float32),
                 jax.ShapeDtypeStruct((Mp, Np), jnp.float32))
    cparams = pltpu.CompilerParams(
        dimension_semantics=("parallel",),               # row tiles are independent
        vmem_limit_bytes=48 * 1024 * 1024,               # stay under v7x's 64 MiB
    )

    use_dropout = training and dropout_rate > 0.0
    if use_dropout:
        if dropout_key is None:
            raise ValueError("dropout_key is required when training with dropout")
        bits1, bits2 = dropout_bits(dropout_key, (Mp, Hp))
        keep_threshold = int(round(float(dropout_rate) * 2.0 ** 32))
        keep_scale = 1.0 / (1.0 - float(dropout_rate))
        kernel = functools.partial(qa_heads_train_kernel,
                                   keep_threshold=keep_threshold,
                                   keep_scale=keep_scale)
        o1, o2 = pl.pallas_call(
            kernel,
            out_shape=out_shape,
            grid=grid,
            in_specs=[x_spec, x_spec, x_spec, w_spec, b_spec, w_spec, b_spec],
            out_specs=(o_spec, o_spec),
            compiler_params=cparams,
        )(xp, bits1, bits2, w1p, b1p, w2p, b2p)
    else:
        o1, o2 = pl.pallas_call(
            qa_heads_eval_kernel,
            out_shape=out_shape,
            grid=grid,
            in_specs=[x_spec, w_spec, b_spec, w_spec, b_spec],
            out_specs=(o_spec, o_spec),
            compiler_params=cparams,
        )(xp, w1p, b1p, w2p, b2p)

    start_logits = o1[:Btot, :num_labels].reshape(B, S, num_labels)
    end_logits = o2[:Btot, :num_labels].reshape(B, S, num_labels)
    return start_logits, end_logits


# ---------------------------------------------------------------------------
# Self-test
# ---------------------------------------------------------------------------
if __name__ == "__main__":
    batch, seq, hidden, num_labels = 2, 8, 96, 2   # small stand-in for (B, S, 768)->2
    dropout_rate = 0.1

    key = jax.random.PRNGKey(0)
    k_x, k_w1, k_b1, k_w2, k_b2, k_drop = jax.random.split(key, 6)

    hidden_states = jax.random.normal(k_x, (batch, seq, hidden), jnp.float32)
    lim = 1.0 / jnp.sqrt(hidden)
    # weights stored pre-transposed as (in_features, out_features)
    w1 = jax.random.uniform(k_w1, (hidden, num_labels), jnp.float32, -lim, lim)
    b1 = jax.random.uniform(k_b1, (num_labels,), jnp.float32, -lim, lim)
    w2 = jax.random.uniform(k_w2, (hidden, num_labels), jnp.float32, -lim, lim)
    b2 = jax.random.uniform(k_b2, (num_labels,), jnp.float32, -lim, lim)

    x_flat = hidden_states.reshape(batch * seq, hidden)
    hi = jax.lax.Precision.HIGHEST

    # ---- eval mode (dropout = identity) vs pure-JAX reference -------------
    s_eval, e_eval = bertqa_heads_forward(
        hidden_states, w1, b1, w2, b2,
        dropout_rate=dropout_rate, training=False)
    s_eval, e_eval = jax.block_until_ready((s_eval, e_eval))
    s_ref = (jnp.dot(x_flat, w1, precision=hi) + b1).reshape(batch, seq, num_labels)
    e_ref = (jnp.dot(x_flat, w2, precision=hi) + b2).reshape(batch, seq, num_labels)
    assert s_eval.shape == (batch, seq, num_labels)
    assert e_eval.shape == (batch, seq, num_labels)
    assert jnp.allclose(s_eval, s_ref, atol=1e-3, rtol=1e-3)
    assert jnp.allclose(e_eval, e_ref, atol=1e-3, rtol=1e-3)

    # ---- training mode: rebuild the exact dropout masks host-side ---------
    s_tr, e_tr = bertqa_heads_forward(
        hidden_states, w1, b1, w2, b2,
        dropout_rate=dropout_rate, training=True, dropout_key=k_drop)
    s_tr, e_tr = jax.block_until_ready((s_tr, e_tr))

    Btot = batch * seq
    Hp = _round_up(hidden, LANE)
    TM = min(256, _round_up(Btot, SUBLANE))
    Mp = _round_up(Btot, TM)
    bits1, bits2 = dropout_bits(k_drop, (Mp, Hp))
    thr = jnp.uint32(int(round(dropout_rate * 2.0 ** 32)))
    scale = 1.0 / (1.0 - dropout_rate)
    x1 = jnp.where(bits1[:Btot, :hidden] >= thr, x_flat * scale, 0.0)
    x2 = jnp.where(bits2[:Btot, :hidden] >= thr, x_flat * scale, 0.0)
    s_tr_ref = (jnp.dot(x1, w1, precision=hi) + b1).reshape(batch, seq, num_labels)
    e_tr_ref = (jnp.dot(x2, w2, precision=hi) + b2).reshape(batch, seq, num_labels)
    assert s_tr.shape == (batch, seq, num_labels)
    assert e_tr.shape == (batch, seq, num_labels)
    assert jnp.allclose(s_tr, s_tr_ref, atol=1e-3, rtol=1e-3)
    assert jnp.allclose(e_tr, e_tr_ref, atol=1e-3, rtol=1e-3)

    print("KERNEL_OK")
</pallas_src>

<mosaic_0001>
module attributes {stable_mosaic.version = 11 : i64} {
  func.func @qa_heads_eval_kernel(%arg0: i32, %arg1: memref<16x128xf32, #tpu.memory_space<vmem>>, %arg2: memref<128x128xf32, #tpu.memory_space<vmem>>, %arg3: memref<1x128xf32, #tpu.memory_space<vmem>>, %arg4: memref<128x128xf32, #tpu.memory_space<vmem>>, %arg5: memref<1x128xf32, #tpu.memory_space<vmem>>, %arg6: memref<16x128xf32, #tpu.memory_space<vmem>>, %arg7: memref<16x128xf32, #tpu.memory_space<vmem>>) attributes {dimension_semantics = [#tpu.dimension_semantics<parallel>], iteration_bounds = array<i64: 1>, scalar_prefetch = 0 : i64, scratch_operands = 0 : i64, tpu.core_type = #tpu.core_type<tc>, window_params = [{transform_indices = @transform_0, window_bounds = array<i64: 16, 128>}, {pipeline_mode = #tpu.pipeline_mode<synchronous>, transform_indices = @transform_1, window_bounds = array<i64: 128, 128>}, {pipeline_mode = #tpu.pipeline_mode<synchronous>, transform_indices = @transform_2, window_bounds = array<i64: 1, 128>}, {pipeline_mode = #tpu.pipeline_mode<synchronous>, transform_indices = @transform_3, window_bounds = array<i64: 128, 128>}, {pipeline_mode = #tpu.pipeline_mode<synchronous>, transform_indices = @transform_4, window_bounds = array<i64: 1, 128>}, {transform_indices = @transform_5, window_bounds = array<i64: 16, 128>}, {transform_indices = @transform_6, window_bounds = array<i64: 16, 128>}]} {
    %c0 = arith.constant 0 : index
    %c0_0 = arith.constant 0 : index
    %0 = vector.load %arg1[%c0, %c0_0] : memref<16x128xf32, #tpu.memory_space<vmem>>, vector<16x128xf32>
    %c0_1 = arith.constant 0 : index
    %c0_2 = arith.constant 0 : index
    %1 = vector.load %arg2[%c0_1, %c0_2] : memref<128x128xf32, #tpu.memory_space<vmem>>, vector<128x128xf32>
    %cst = arith.constant dense<0.000000e+00> : vector<16x128xf32>
    %2 = tpu.matmul %0, %1, %cst {dimension_numbers = #tpu.dot_dimension_numbers<[1], [0], [0], [1], [0, 0, 1, 1], [], []>} : vector<16x128xf32>, vector<128x128xf32>, vector<16x128xf32> -> vector<16x128xf32>
    %c0_3 = arith.constant 0 : index
    %c0_4 = arith.constant 0 : index
    %3 = vector.load %arg3[%c0_3, %c0_4] : memref<1x128xf32, #tpu.memory_space<vmem>>, vector<1x128xf32>
    %4 = vector.broadcast %3 : vector<1x128xf32> to vector<16x128xf32>
    %5 = arith.addf %2, %4 : vector<16x128xf32>
    %c0_5 = arith.constant 0 : index
    %c0_6 = arith.constant 0 : index
    %6 = vector.load %arg6[%c0_5, %c0_6] : memref<16x128xf32, #tpu.memory_space<vmem>>, vector<16x128xf32>
    tpu.vector_store %arg6[%c0_5, %c0_6], %5 {strides = array<i32>} : memref<16x128xf32, #tpu.memory_space<vmem>>, vector<16x128xf32>,
    %c0_7 = arith.constant 0 : index
    %c0_8 = arith.constant 0 : index
    %7 = vector.load %arg4[%c0_7, %c0_8] : memref<128x128xf32, #tpu.memory_space<vmem>>, vector<128x128xf32>
    %cst_9 = arith.constant dense<0.000000e+00> : vector<16x128xf32>
    %8 = tpu.matmul %0, %7, %cst_9 {dimension_numbers = #tpu.dot_dimension_numbers<[1], [0], [0], [1], [0, 0, 1, 1], [], []>} : vector<16x128xf32>, vector<128x128xf32>, vector<16x128xf32> -> vector<16x128xf32>
    %c0_10 = arith.constant 0 : index
    %c0_11 = arith.constant 0 : index
    %9 = vector.load %arg5[%c0_10, %c0_11] : memref<1x128xf32, #tpu.memory_space<vmem>>, vector<1x128xf32>
    %10 = vector.broadcast %9 : vector<1x128xf32> to vector<16x128xf32>
    %11 = arith.addf %8, %10 : vector<16x128xf32>
    %c0_12 = arith.constant 0 : index
    %c0_13 = arith.constant 0 : index
    %12 = vector.load %arg7[%c0_12, %c0_13] : memref<16x128xf32, #tpu.memory_space<vmem>>, vector<16x128xf32>
    tpu.vector_store %arg7[%c0_12, %c0_13], %11 {strides = array<i32>} : memref<16x128xf32, #tpu.memory_space<vmem>>, vector<16x128xf32>,
    return
  }
  func.func @transform_0(%arg0: i32) -> (i32, i32) {
    %c0_i32 = arith.constant 0 : i32
    %c0_i32_0 = arith.constant 0 : i32
    return %arg0, %c0_i32 : i32, i32
  }
  func.func @transform_1(%arg0: i32) -> (i32, i32) {
    %c0_i32 = arith.constant 0 : i32
    %c0_i32_0 = arith.constant 0 : i32
    %c0_i32_1 = arith.constant 0 : i32
    return %c0_i32, %c0_i32_0 : i32, i32
  }
  func.func @transform_2(%arg0: i32) -> (i32, i32) {
    %c0_i32 = arith.constant 0 : i32
    %c0_i32_0 = arith.constant 0 : i32
    %c0_i32_1 = arith.constant 0 : i32
    return %c0_i32, %c0_i32_0 : i32, i32
  }
  func.func @transform_3(%arg0: i32) -> (i32, i32) {
    %c0_i32 = arith.constant 0 : i32
    %c0_i32_0 = arith.constant 0 : i32
    %c0_i32_1 = arith.constant 0 : i32
    return %c0_i32, %c0_i32_0 : i32, i32
  }
  func.func @transform_4(%arg0: i32) -> (i32, i32) {
    %c0_i32 = arith.constant 0 : i32
    %c0_i32_0 = arith.constant 0 : i32
    %c0_i32_1 = arith.constant 0 : i32
    return %c0_i32, %c0_i32_0 : i32, i32
  }
  func.func @transform_5(%arg0: i32) -> (i32, i32) {
    %c0_i32 = arith.constant 0 : i32
    %c0_i32_0 = arith.constant 0 : i32
    return %arg0, %c0_i32 : i32, i32
  }
  func.func @transform_6(%arg0: i32) -> (i32, i32) {
    %c0_i32 = arith.constant 0 : i32
    %c0_i32_0 = arith.constant 0 : i32
    return %arg0, %c0_i32 : i32, i32
  }
}

</mosaic_0001>

<bundles_post_ra>
// kernel: tpu_custom_call.1
= control target key start
LH: loop header
LB: loop body
LE: loop exit
PB: predicated region body
PF: predicated region fallthrough
CT: control target
= control target key end

     0   :  { %12 = vsyncpa [#allocation3], 0  ;;  %s735_s0 = inlined_call_operand.hbm [shape: f32[16,128], index: 0, kind: input, shape index: {}]   ;;  %s736_s1 = inlined_call_operand.hbm [shape: f32[128,128], index: 1, kind: input, shape index: {}]   ;;  %s737_s2 = inlined_call_operand.vmem [shape: f32[1,128], index: 2, kind: input, shape index: {}]   ;;  %s738_s3 = inlined_call_operand.hbm [shape: f32[128,128], index: 3, kind: input, shape index: {}]   ;;  %s739_s4 = inlined_call_operand.vmem [shape: f32[1,128], index: 4, kind: input, shape index: {}]   ;;  %s740_s5 = inlined_call_operand.hbm [shape: f32[16,128], index: 5, kind: output, shape index: {0}]   ;;  %s741_s6 = inlined_call_operand.hbm [shape: f32[16,128], index: 6, kind: output, shape index: {1}]  }
   0x1   :  { %13 = vsyncpa [#allocation6], 0 }
   0x2   :  { %14 = vsyncpa [#allocation4], 0 }
   0x3   :  { %15 = vsyncpa [#allocation10], 0  ;;  %s598_s21 = smov [#allocation5]   ;;  %s599_s23 = smov [#allocation2]  }
   0x4   :  { %s33_s22 = sshll.u32 %s598_s21, 4  ;;  %s21_s24 = sshll.u32 %s599_s23, 4  ;;  %s34_s22 = int_to_ptr.vmem [resolvable:$true] %s33_s22  ;;  %s640_s24 = int_to_ptr.vmem [resolvable:$true] %s21_s24 }
   0x5   :  { %s480_s27 = scalar_lea.hbm %s736_s1, 2048 }
   0x6   :  { %p481_p0 = scmp.ne.s32.totalorder %s736_s1, %s480_s27  ;;  %p484_p1 = scmp.lt.u32.totalorder %s480_s27, %s736_s1 }
   0x8   :  { %p486_p2 = pnand %p484_p1, %p481_p0 }
   0xa   :  { %489 = shalt.err (!%p486_p2)
}
   0xb   :  { %s490_s8 = scalar_lea.vmem %s34_s22, 2048  ;;  %p495_p4 = scmp.lt.s32.totalorder %s34_s22, %s34_s22 }
   0xc   :  { %p491_p3 = scmp.ne.s32.totalorder %s34_s22, %s490_s8  ;;  %p496_p5 = scmp.lt.s32.totalorder %s490_s8, %s490_s8 }
   0xe   :  { %p497_p6 = por %p496_p5, %p495_p4 }
  0x10   :  { %p498_p7 = pnand %p497_p6, %p491_p3 }
  0x12   :  { %501 = shalt.err (!%p498_p7)
}
  0x13   :  { %s600_s9 = smov 128   ;;  %s601_s10 = smov 8  }
  0x14   :  { %39 = dma.hbm_to_vmem [thread:$0]  %s736_s1, 2048, %s34_s22, [#allocation6], %s600_s9, %s600_s9, %s601_s10  }
  0x15   :  { %s502_s15 = scalar_lea.hbm %s735_s0, 256 }
  0x16   :  { %p503_p8 = scmp.ne.s32.totalorder %s735_s0, %s502_s15  ;;  %p506_p9 = scmp.lt.u32.totalorder %s502_s15, %s735_s0 }
  0x18   :  { %p508_p10 = pnand %p506_p9, %p503_p8 }
  0x1a   :  { %511 = shalt.err (!%p508_p10)
}
  0x1b   :  { %s512_s20 = scalar_lea.vmem %s640_s24, 256  ;;  %p517_p12 = scmp.lt.s32.totalorder %s640_s24, %s640_s24 }
  0x1c   :  { %p513_p11 = scmp.ne.s32.totalorder %s640_s24, %s512_s20  ;;  %p518_p13 = scmp.lt.s32.totalorder %s512_s20, %s512_s20 }
  0x1e   :  { %p519_p0 = por %p518_p13, %p517_p12 }
  0x20   :  { %p520_p1 = pnand %p519_p0, %p513_p11 }
  0x22   :  { %523 = shalt.err (!%p520_p1)
}
  0x23   :  { %27 = dma.hbm_to_vmem [thread:$0]  %s735_s0, 256, %s640_s24, [#allocation3], %s600_s9, %s600_s9, %s601_s10  }
  0x24   :  { %s602_s22 = smov [#allocation7]   ;;  %s524_s27 = scalar_lea.hbm %s738_s3, 2048 }
  0x25   :  { %s47_s23 = sshll.u32 %s602_s22, 4  ;;  %p525_p2 = scmp.ne.s32.totalorder %s738_s3, %s524_s27  ;;  %s48_s23 = int_to_ptr.vmem [resolvable:$true] %s47_s23 }
  0x26   :  { %p528_p3 = scmp.lt.u32.totalorder %s524_s27, %s738_s3 }
  0x28   :  { %p530_p4 = pnand %p528_p3, %p525_p2 }
  0x2a   :  { %533 = shalt.err (!%p530_p4)
}
  0x2b   :  { %s534_s8 = scalar_lea.vmem %s48_s23, 2048  ;;  %p539_p6 = scmp.lt.s32.totalorder %s48_s23, %s48_s23 }
  0x2c   :  { %p535_p5 = scmp.ne.s32.totalorder %s48_s23, %s534_s8  ;;  %p540_p7 = scmp.lt.s32.totalorder %s534_s8, %s534_s8 }
  0x2e   :  { %p541_p8 = por %p540_p7, %p539_p6 }
  0x30   :  { %p542_p9 = pnand %p541_p8, %p535_p5 }
  0x32   :  { %545 = shalt.err (!%p542_p9)
}
  0x33   :  { %53 = dma.hbm_to_vmem [thread:$0]  %s738_s3, 2048, %s48_s23, [#allocation6], %s600_s9, %s600_s9, %s601_s10  }
  0x34   :  { %590 = dma.done.wait [#allocation3], 256  }
  0x35   :  { %591 = vsyncadd [#allocation3], 4294967040 }
  0x36   :  { %592 = dma.done.wait [#allocation6], 4096  }
  0x37   :  { %593 = vsyncadd [#allocation6], 4294963200  ;;  %v67_v0 = vld [vmem:[#allocation5] sm:$0xff]  ;;  %v68_v1 = vld [vmem:[#allocation5 + $0x8] sm:$0xff]  ;;  %s603_s14 = smov [#allocation8]   ;;  %s604_s16 = smov [#allocation9]  }
  0x38   :  { %v167_v2 = vld [vmem:[#allocation7] sm:$0xff]  ;;  %v409_v3 = vpack.c.bf16 %v68_v1, %v67_v0  ;;  %v168_v4 = vld [vmem:[#allocation7 + $0x8] sm:$0xff]  ;;  %v69_v5 = vld [vmem:[#allocation5 + $0x10] sm:$0xff]  ;;  %s272_s15 = sshll.u32 %s603_s14, 4  ;;  %s284_s17 = sshll.u32 %s604_s16, 4  ;;  %s273_s15 = int_to_ptr.vmem [resolvable:$true] %s272_s15  ;;  %s698_s17 = int_to_ptr.vmem [resolvable:$true] %s284_s17 }
  0x39   :  { %v70_v6 = vld [vmem:[#allocation5 + $0x18] sm:$0xff]  ;;  %v441_v7 = vpack.c.bf16 %v168_v4, %v167_v2  ;;  %v169_v9 = vld [vmem:[#allocation7 + $0x10] sm:$0xff]  ;;  %v71_v11 = vld [vmem:[#allocation5 + $0x20] sm:$0xff]  ;;  %p551_p11 = scmp.lt.s32.totalorder %s273_s15, %s273_s15 }
  0x3a   :  { %v413_v8 = vpack.c.bf16 %v70_v6, %v69_v5  ;;  %v170_v10 = vld [vmem:[#allocation7 + $0x18] sm:$0xff]  ;;  %410 = vmatprep.subr.bf16.mxu0 %v409_v3  ;;  %v72_v13 = vld [vmem:[#allocation5 + $0x28] sm:$0xff]  ;;  %v171_v14 = vld [vmem:[#allocation7 + $0x20] sm:$0xff] }
  0x3b   :  { %v445_v12 = vpack.c.bf16 %v170_v10, %v169_v9  ;;  %v172_v15 = vld [vmem:[#allocation7 + $0x28] sm:$0xff]  ;;  %442 = vmatprep.subr.bf16.mxu1 %v441_v7  ;;  %412 = vmatpush3.bf16.msra.mxu0 %v409_v3  ;;  %v417_v16 = vpack.c.bf16 %v72_v13, %v71_v11  ;;  %v73_v18 = vld [vmem:[#allocation5 + $0x30] sm:$0xff]  ;;  %v74_v19 = vld [vmem:[#allocation5 + $0x38] sm:$0xff] }
  0x3c   :  { %444 = vmatpush3.bf16.msra.mxu1 %v441_v7  ;;  %414 = vmatprep.subr.bf16.mxu0 %v413_v8  ;;  %v449_v17 = vpack.c.bf16 %v172_v15, %v171_v14  ;;  %v173_v20 = vld [vmem:[#allocation7 + $0x30] sm:$0xff]  ;;  %v174_v21 = vld [vmem:[#allocation7 + $0x38] sm:$0xff]  ;;  %v421_v22 = vpack.c.bf16 %v74_v19, %v73_v18  ;;  %v75_v24 = vld [vmem:[#allocation5 + $0x40] sm:$0xff] }
  0x3d   :  { %446 = vmatprep.subr.bf16.mxu1 %v445_v12  ;;  %v453_v23 = vpack.c.bf16 %v174_v21, %v173_v20  ;;  %v76_v25 = vld [vmem:[#allocation5 + $0x48] sm:$0xff]  ;;  %v65_v26 = vld [vmem:[#allocation2] sm:$0xff]  ;;  %v175_v27 = vld [vmem:[#allocation7 + $0x40] sm:$0xff] }
  0x3e   :  { %v176_v28 = vld [vmem:[#allocation7 + $0x48] sm:$0xff]  ;;  %371 = vmatprep.mubr.f32.mxu0 %v65_v26  ;;  %406 = vmatprep.mubr.f32.mxu1 %v65_v26  ;;  %v425_v29 = vpack.c.bf16 %v76_v25, %v75_v24  ;;  %v77_v31 = vld [vmem:[#allocation5 + $0x50] sm:$0xff]  ;;  %v78_v32 = vld [vmem:[#allocation5 + $0x58] sm:$0xff] }
  0x3f   :  { %416 = vmatpush3.bf16.msra.mxu0 %v413_v8  ;;  %v457_v30 = vpack.c.bf16 %v176_v28, %v175_v27  ;;  %v177_v33 = vld [vmem:[#allocation7 + $0x50] sm:$0xff]  ;;  %v178_v34 = vld [vmem:[#allocation7 + $0x58] sm:$0xff]  ;;  %v429_v35 = vpack.c.bf16 %v78_v32, %v77_v31  ;;  %v79_v37 = vld [vmem:[#allocation5 + $0x60] sm:$0xff] }
  0x40   :  { %448 = vmatpush3.bf16.msra.mxu1 %v445_v12  ;;  %418 = vmatprep.subr.bf16.mxu0 %v417_v16  ;;  %v461_v36 = vpack.c.bf16 %v178_v34, %v177_v33  ;;  %v80_v38 = vld [vmem:[#allocation5 + $0x68] sm:$0xff]  ;;  %v179_v39 = vld [vmem:[#allocation7 + $0x60] sm:$0xff]  ;;  %v81_v43 = vld [vmem:[#allocation5 + $0x70] sm:$0xff] }
  0x41   :  { %450 = vmatprep.subr.bf16.mxu1 %v449_v17  ;;  %v180_v40 = vld [vmem:[#allocation7 + $0x68] sm:$0xff]  ;;  %v433_v41 = vpack.c.bf16 %v80_v38, %v79_v37  ;;  %v82_v44 = vld [vmem:[#allocation5 + $0x78] sm:$0xff]  ;;  %v181_v45 = vld [vmem:[#allocation7 + $0x70] sm:$0xff] }
  0x42   :  { %v465_v42 = vpack.c.bf16 %v180_v40, %v179_v39  ;;  %v182_v46 = vld [vmem:[#allocation7 + $0x78] sm:$0xff]  ;;  %v437_v47 = vpack.c.bf16 %v82_v44, %v81_v43  ;;  %v301_v50 = vld [vmem:[%s737_s2] ss:$0 sm:$0xff]  ;;  %s546_s2 = scalar_lea.vmem %s273_s15, 256 }
  0x43   :  { %420 = vmatpush3.bf16.msra.mxu0 %v417_v16  ;;  %v469_v48 = vpack.c.bf16 %v182_v46, %v181_v45  ;;  %v66_v49 = vld [vmem:[#allocation2 + $0x8] sm:$0xff]  ;;  %v302_v51 = vld [vmem:[%s739_s4] ss:$0 sm:$0xff]  ;;  %p547_p10 = scmp.ne.s32.totalorder %s273_s15, %s546_s2  ;;  %p552_p12 = scmp.lt.s32.totalorder %s546_s2, %s546_s2 }
  0x44   :  { %452 = vmatpush3.bf16.msra.mxu1 %v449_v17  ;;  %422 = vmatprep.subr.bf16.mxu0 %v421_v22 }
  0x45   :  { %454 = vmatprep.subr.bf16.mxu1 %v453_v23  ;;  %p553_p13 = por %p552_p12, %p551_p11 }
  0x47   :  { %424 = vmatpush3.bf16.msra.mxu0 %v421_v22  ;;  %p554_p0 = pnand %p553_p13, %p547_p10 }
  0x48   :  { %456 = vmatpush3.bf16.msra.mxu1 %v453_v23  ;;  %426 = vmatprep.subr.bf16.mxu0 %v425_v29 }
  0x49   :  { %458 = vmatprep.subr.bf16.mxu1 %v457_v30 }
  0x4b   :  { %428 = vmatpush3.bf16.msra.mxu0 %v425_v29 }
  0x4c   :  { %460 = vmatpush3.bf16.msra.mxu1 %v457_v30  ;;  %430 = vmatprep.subr.bf16.mxu0 %v429_v35 }
  0x4d   :  { %462 = vmatprep.subr.bf16.mxu1 %v461_v36 }
  0x4f   :  { %432 = vmatpush3.bf16.msra.mxu0 %v429_v35 }
  0x50   :  { %464 = vmatpush3.bf16.msra.mxu1 %v461_v36  ;;  %434 = vmatprep.subr.bf16.mxu0 %v433_v41 }
  0x51   :  { %466 = vmatprep.subr.bf16.mxu1 %v465_v42 }
  0x53   :  { %436 = vmatpush3.bf16.msra.mxu0 %v433_v41 }
  0x54   :  { %468 = vmatpush3.bf16.msra.mxu1 %v465_v42  ;;  %438 = vmatprep.subr.bf16.mxu0 %v437_v47 }
  0x55   :  { %470 = vmatprep.subr.bf16.mxu1 %v469_v48 }
  0x57   :  { %440 = vmatpush3.bf16.msra.mxu0 %v437_v47 }
  0x58   :  { %472 = vmatpush3.bf16.msra.mxu1 %v469_v48 }
  0x5a   :  { %372 = vmatmul.mubr.f32.vlgmr.msra.gmra.mrb[0].mxu0 %v66_v49 }
  0x5b   :  { %407 = vmatmul.mubr.f32.vlgmr.msra.gmra.mrb[0].mxu1 %v66_v49 }
 0x12d   :  { %v373_v52 = vpop.f32.mrb[0].mxu0 }
 0x12e   :  { %v162_v53 = vadd.f32 %v373_v52, %v301_v50  ;;  %v408_v54 = vpop.f32.mrb[0].mxu1  ;;  %v156_v55 = vpop.f32.mrb[1].mxu0 }
 0x12f   :  { %v262_v56 = vadd.f32 %v408_v54, %v302_v51  ;;  %v157_v57 = vadd.f32 %v301_v50, %v156_v55  ;;  %v256_v58 = vpop.f32.mrb[1].mxu1 }
 0x130   :  { %166 = vst [vmem:[#allocation8 + $0x8] sm:$0xff] %v162_v53  ;;  %v257_v59 = vadd.f32 %v302_v51, %v256_v58 }
 0x131   :  { %266 = vst [vmem:[#allocation9 + $0x8] sm:$0xff] %v262_v56  ;;  %165 = vst [vmem:[#allocation8] sm:$0xff] %v157_v57 }
 0x132   :  { %265 = vst [vmem:[#allocation9] sm:$0xff] %v257_v59 }
 0x133   :  { %557 = shalt.err (!%p554_p0)
}
 0x134   :  { %s558_s19 = scalar_lea.hbm %s740_s5, 256 }
 0x135   :  { %p559_p1 = scmp.ne.s32.totalorder %s740_s5, %s558_s19  ;;  %p562_p2 = scmp.lt.u32.totalorder %s558_s19, %s740_s5 }
 0x137   :  { %p564_p3 = pnand %p562_p2, %p559_p1 }
 0x139   :  { %567 = shalt.err (!%p564_p3)
}
 0x13a   :  { %278 = dma.vmem_to_hbm [thread:$0]  %s273_s15, 256, %s740_s5, [#allocation4], %s600_s9, %s600_s9, %s601_s10  }
 0x13b   :  { %s568_s26 = scalar_lea.vmem %s698_s17, 256  ;;  %p573_p5 = scmp.lt.s32.totalorder %s698_s17, %s698_s17 }
 0x13c   :  { %p569_p4 = scmp.ne.s32.totalorder %s698_s17, %s568_s26  ;;  %p574_p6 = scmp.lt.s32.totalorder %s568_s26, %s568_s26 }
 0x13e   :  { %p575_p7 = por %p574_p6, %p573_p5 }
 0x140   :  { %p576_p8 = pnand %p575_p7, %p569_p4 }
 0x142   :  { %579 = shalt.err (!%p576_p8)
}
 0x143   :  { %s580_s29 = scalar_lea.hbm %s741_s6, 256 }
 0x144   :  { %p581_p9 = scmp.ne.s32.totalorder %s741_s6, %s580_s29  ;;  %p584_p10 = scmp.lt.u32.totalorder %s580_s29, %s741_s6 }
 0x146   :  { %p586_p11 = pnand %p584_p10, %p581_p9 }
 0x148   :  { %589 = shalt.err (!%p586_p11)
}
 0x149   :  { %290 = dma.vmem_to_hbm [thread:$0]  %s698_s17, 256, %s741_s6, [#allocation10], %s600_s9, %s600_s9, %s601_s10  }
 0x14a   :  { %594 = dma.done.wait [#allocation4], 256  }
 0x14b   :  { %595 = vsyncadd [#allocation4], 4294967040 }
 0x14c   :  { %596 = dma.done.wait [#allocation10], 256  }
 0x14d   :  { %597 = vsyncadd [#allocation10], 4294967040 }
 0x14e   :  { %297 = vsyncpa [#allocation3], 1 }
 0x14f   :  { %298 = vsyncpa [#allocation6], 1 }
 0x150   :  { %299 = vsyncpa [#allocation4], 1 }
 0x151   :  { %300 = vsyncpa [#allocation10], 1 }

</bundles_post_ra>
